<compile_context>
chip_gen: v7x
topology: tpu7x:2x2x1
jax: 0.10.0
libtpu: 0.0.40
codegen_flags: <defaults>
</compile_context>

<pallas_src>
import enum
import functools

import jax
import jax.numpy as jnp
from jax.experimental import pallas as pl
from jax.experimental.pallas import tpu as pltpu


class ResidualMode(enum.Enum):
    NONE = 0
    BASIC_RESIDUAL = 1
    GATED = 2
    GATED_RESIDUAL = 3


def _residual_kernel(x_ref, w_ref, b_ref, o_ref, *, mode, c_out, seg, nb):
    """Fused core-conv / shortcut-conv / gating / residual kernel (NCHW).

    x_ref : (nb, C_in, TP)       pixel tile(s); pixels on the lane axis
    w_ref : (n_seg*seg, C_in)    fused transposed weight [wc1; wc2; ws] (padded)
    b_ref : (n_seg*seg, 1)       fused bias (padded, f32)
    o_ref : (nb, C_out, TP)      output tile (lane-dense)
    """
    w = w_ref[...]
    b = b_ref[...]
    # Static unroll over the (small) batch sub-block: each iteration is one
    # wide MXU pass for all 1-3 convolutions, f32 accumulation, bias folded in.
    for n in range(nb):
        y = jnp.dot(w, x_ref[n], preferred_element_type=jnp.float32) + b
        xc1 = y[:c_out]
        if mode == ResidualMode.NONE:
            out = xc1
        elif mode == ResidualMode.GATED:
            out = xc1 * jax.nn.sigmoid(y[seg:seg + c_out])
        elif mode == ResidualMode.BASIC_RESIDUAL:
            out = xc1 + y[seg:seg + c_out]
        elif mode == ResidualMode.GATED_RESIDUAL:
            # torch.addcmul(xs, xc1, sigmoid(xc2))
            out = y[2 * seg:2 * seg + c_out] + xc1 * jax.nn.sigmoid(y[seg:seg + c_out])
        else:
            raise NotImplementedError(mode)
        o_ref[n] = out.astype(o_ref.dtype)


def _round_up(v, m):
    return (v + m - 1) // m * m


def _largest_divisor_leq(n, k):
    k = max(1, min(n, k))
    return max(d for d in range(1, k + 1) if n % d == 0)


def _tpu_vmem_budget():
    """(tile_budget, vmem_limit_cap, want_two_grid_steps) for this generation."""
    try:
        cap = int(pltpu.get_tpu_info().vmem_capacity_bytes)
    except Exception:
        cap = 64 << 20  # conservative (v7x-class) if the query is unavailable
    if cap >= (96 << 20):
        # v5e / v6e: 128 MiB physical VMEM, single TensorCore.
        return (48 << 20), (64 << 20), False
    # v7x-class: 64 MiB physical VMEM, 2 TensorCores sharing HBM.
    return (20 << 20), (32 << 20), True


def _plan_tiles(N, HW, c_in, c_out, c_y, x_isz, o_isz, w_bytes,
                tile_budget, target_step_bytes, want_two_steps):
    """Pick (batch items per step, pixel tile) from a bytes-per-step target."""
    io_px = c_in * x_isz + c_out * o_isz          # HBM bytes per pixel per item
    vmem_px = 2 * io_px + c_y * 4                 # dbl-buffered x/out + f32 intermediate
    slack = 1 << 20

    # 1) Batch items per grid step: amortize per-step overhead when one image
    #    is smaller than the byte target (NCHW keeps the block rectangular).
    nb = 1
    if N > 1 and HW * io_px < target_step_bytes:
        nb_want = min(N, max(1, target_step_bytes // max(HW * io_px, 1)))
        nb = _largest_divisor_leq(N, nb_want)

    if nb > 1:
        while nb > 1 and nb * HW * vmem_px + w_bytes + slack > tile_budget:
            nb = _largest_divisor_leq(N, nb - 1)
        tp = HW
    else:
        # 2) Pixel tile sized by bytes/step, bounded by the VMEM tile budget.
        tp_target = max(128, (target_step_bytes // io_px) // 128 * 128)
        tp_vmem = max(128, ((tile_budget - w_bytes - slack) // vmem_px) // 128 * 128)
        tp = min(tp_target, tp_vmem)
        if HW <= tp or HW < 128:
            tp = HW   # full pixel axis is always a legal block shape
        # else: 128-multiple tile; a ragged tail is handled by a partial block.

    # 3) 2-TC chips: make sure both TensorCores get work on this mem-bound kernel.
    if want_two_steps:
        while (N // nb) * pl.cdiv(HW, tp) < 2:
            if nb > 1:
                nb = _largest_divisor_leq(N, nb - 1)
            elif tp >= 256:
                tp = max(128, (tp // 2) // 128 * 128)
            else:
                break
    return nb, tp


def residual_forward(x_nchw, params, mode: ResidualMode, *,
                     compute_dtype=None, target_step_bytes=4 << 20):
    """Fused Residual forward in native NCHW layout.

    x_nchw : (N, C_in, H, W) — same layout as the PyTorch module.
    params : dict with 'wc' (C_in, C_core), 'bc' (C_core,),
                       'ws' (C_in, C_out), 'bs' (C_out,).
    compute_dtype : optional lower-precision I/O dtype (e.g. jnp.bfloat16);
                    accumulation/gating stay in f32.
    """
    N, C_in, H, W = x_nchw.shape
    wc, bc = params["wc"], params["bc"]
    ws, bs = params["ws"], params["bs"]
    gated = mode in (ResidualMode.GATED, ResidualMode.GATED_RESIDUAL)
    C_core = wc.shape[1]
    C_out = C_core // 2 if gated else C_core

    # Only the weight segments this mode actually uses (no dead DMAs), transposed
    # to (C_out, C_in).  chunk(2, dim=1) of the core output == splitting the core
    # weight's output-channel axis.
    if mode == ResidualMode.NONE:
        segs = [(wc.T, bc)]
    elif mode == ResidualMode.GATED:
        segs = [(wc[:, :C_out].T, bc[:C_out]), (wc[:, C_out:].T, bc[C_out:])]
    elif mode == ResidualMode.BASIC_RESIDUAL:
        segs = [(wc.T, bc), (ws.T, bs)]
    elif mode == ResidualMode.GATED_RESIDUAL:
        segs = [(wc[:, :C_out].T, bc[:C_out]), (wc[:, C_out:].T, bc[C_out:]),
                (ws.T, bs)]
    else:
        raise NotImplementedError(mode)

    w_dtype = compute_dtype if compute_dtype is not None else x_nchw.dtype
    out_dtype = compute_dtype if compute_dtype is not None else x_nchw.dtype

    # Pad each segment's output channels so the in-kernel slices of the fused
    # f32 result are sublane-aligned (16 for packed sub-32-bit weights, else 8).
    sub = 16 if jnp.dtype(w_dtype).itemsize < 4 else 8
    seg = _round_up(C_out, sub)
    pad = seg - C_out
    n_seg = len(segs)
    w_fused = jnp.concatenate(
        [jnp.pad(w, ((0, pad), (0, 0))) for w, _ in segs], axis=0).astype(w_dtype)
    b_fused = jnp.concatenate(
        [jnp.pad(b, (0, pad)) for _, b in segs], axis=0
    ).astype(jnp.float32).reshape(-1, 1)
    c_y = n_seg * seg

    HW = H * W
    x3 = x_nchw.reshape(N, C_in, HW)              # free reshape (NCHW contiguous)
    if compute_dtype is not None:
        x3 = x3.astype(compute_dtype)

    x_isz = jnp.dtype(x3.dtype).itemsize
    o_isz = jnp.dtype(out_dtype).itemsize
    w_bytes = int(w_fused.size) * jnp.dtype(w_dtype).itemsize + int(b_fused.size) * 4

    tile_budget, limit_cap, want_two_steps = _tpu_vmem_budget()
    nb, tp = _plan_tiles(N, HW, C_in, C_out, c_y, x_isz, o_isz, w_bytes,
                         tile_budget, target_step_bytes, want_two_steps)
    grid = (N // nb, pl.cdiv(HW, tp))

    kernel = functools.partial(_residual_kernel, mode=mode, c_out=C_out,
                               seg=seg, nb=nb)
    x_spec = pl.BlockSpec((nb, C_in, tp), lambda i, p: (i, 0, p))
    o_spec = pl.BlockSpec((nb, C_out, tp), lambda i, p: (i, 0, p))

    # Try single-buffered constant weights first (saves w_bytes of VMEM); fall
    # back to default buffering if this Pallas build rejects Buffered(1).
    last_err = None
    for weight_mode, w_factor in ((pl.Buffered(1), 1), (None, 2)):
        try:
            if weight_mode is not None:
                w_spec = pl.BlockSpec((c_y, C_in), lambda i, p: (0, 0),
                                      pipeline_mode=weight_mode)
                b_spec = pl.BlockSpec((c_y, 1), lambda i, p: (0, 0),
                                      pipeline_mode=weight_mode)
            else:
                w_spec = pl.BlockSpec((c_y, C_in), lambda i, p: (0, 0))
                b_spec = pl.BlockSpec((c_y, 1), lambda i, p: (0, 0))

            # Scoped-VMEM need: double-buffered x/out tiles + f32 intermediate(s)
            # + fused weights + compiler headroom.  Never clamp below the need.
            need = (nb * tp * (2 * (C_in * x_isz + C_out * o_isz) + c_y * 4)
                    + w_factor * w_bytes + (2 << 20))
            vmem_limit = int(max(min(max(need, 16 << 20), limit_cap), need))

            out3 = pl.pallas_call(
                kernel,
                out_shape=jax.ShapeDtypeStruct((N, C_out, HW), out_dtype),
                grid_spec=pltpu.PrefetchScalarGridSpec(
                    num_scalar_prefetch=0,
                    grid=grid,
                    in_specs=[x_spec, w_spec, b_spec],
                    out_specs=o_spec),
                compiler_params=pltpu.CompilerParams(
                    dimension_semantics=("parallel", "parallel"),
                    vmem_limit_bytes=vmem_limit),
            )(x3, w_fused, b_fused)
            return out3.reshape(N, C_out, H, W)
        except Exception as e:  # fall back to default double-buffered weights
            last_err = e
    raise last_err


def _reference(x, params, mode: ResidualMode):
    """Plain-JAX reference matching the PyTorch forward exactly (NCHW)."""
    wc, bc, ws, bs = params["wc"], params["bc"], params["ws"], params["bs"]
    xc = jnp.einsum("nchw,cd->ndhw", x, wc) + bc[None, :, None, None]
    if mode == ResidualMode.NONE:
        return xc
    if mode == ResidualMode.GATED:
        c = xc.shape[1] // 2
        return xc[:, :c] * jax.nn.sigmoid(xc[:, c:])
    xs = jnp.einsum("nchw,cd->ndhw", x, ws) + bs[None, :, None, None]
    if mode == ResidualMode.BASIC_RESIDUAL:
        return xc + xs
    if mode == ResidualMode.GATED_RESIDUAL:
        c = xc.shape[1] // 2
        return xs + xc[:, :c] * jax.nn.sigmoid(xc[:, c:])
    raise NotImplementedError(mode)


def _make_params(key, c_in, c_out, mode):
    gated = mode in (ResidualMode.GATED, ResidualMode.GATED_RESIDUAL)
    c_core = 2 * c_out if gated else c_out
    k1, k2, k3, k4 = jax.random.split(key, 4)
    return {
        "wc": jax.random.normal(k1, (c_in, c_core), jnp.float32) * 0.2,
        "bc": jax.random.normal(k2, (c_core,), jnp.float32) * 0.1,
        "ws": jax.random.normal(k3, (c_in, c_out), jnp.float32) * 0.2,
        "bs": jax.random.normal(k4, (c_out,), jnp.float32) * 0.1,
    }


if __name__ == "__main__":
    key = jax.random.PRNGKey(0)
    kx, kp = jax.random.split(key)

    N, C_in, H, W = 2, 4, 16, 16
    C_out = 4
    x = jax.random.normal(kx, (N, C_in, H, W), jnp.float32)

    ok = True
    for mode in (ResidualMode.NONE, ResidualMode.BASIC_RESIDUAL,
                 ResidualMode.GATED, ResidualMode.GATED_RESIDUAL):
        params = _make_params(kp, C_in, C_out, mode)
        out = jax.block_until_ready(residual_forward(x, params, mode))
        ref = _reference(x, params, mode)
        if out.shape != (N, C_out, H, W):
            ok = False
        if not jnp.allclose(out, ref, atol=1e-5, rtol=1e-5):
            ok = False

    # Optional bf16 I/O path (halves HBM traffic on this mem-bound kernel).
    params = _make_params(kp, C_in, C_out, ResidualMode.GATED_RESIDUAL)
    out_bf16 = jax.block_until_ready(
        residual_forward(x, params, ResidualMode.GATED_RESIDUAL,
                         compute_dtype=jnp.bfloat16))
    ref = _reference(x, params, ResidualMode.GATED_RESIDUAL)
    if out_bf16.dtype != jnp.bfloat16:
        ok = False
    if not jnp.allclose(out_bf16.astype(jnp.float32), ref, atol=1e-1, rtol=1e-1):
        ok = False

    if ok:
        print("KERNEL_OK")
</pallas_src>

<mosaic_0001>
module attributes {stable_mosaic.version = 11 : i64} {
  func.func @_residual_kernel(%arg0: i32, %arg1: i32, %arg2: memref<1x4x256xf32, #tpu.memory_space<vmem>>, %arg3: memref<8x4xf32, #tpu.memory_space<vmem>>, %arg4: memref<8x1xf32, #tpu.memory_space<vmem>>, %arg5: memref<1x4x256xf32, #tpu.memory_space<vmem>>) attributes {dimension_semantics = [#tpu.dimension_semantics<parallel>, #tpu.dimension_semantics<parallel>], iteration_bounds = array<i64: 2, 1>, scalar_prefetch = 0 : i64, scratch_operands = 0 : i64, tpu.core_type = #tpu.core_type<tc>, window_params = [{transform_indices = @transform_0, window_bounds = array<i64: 1, 4, 256>}, {pipeline_mode = #tpu.pipeline_mode<synchronous>, transform_indices = @transform_1, window_bounds = array<i64: 8, 4>}, {pipeline_mode = #tpu.pipeline_mode<synchronous>, transform_indices = @transform_2, window_bounds = array<i64: 8, 1>}, {transform_indices = @transform_3, window_bounds = array<i64: 1, 4, 256>}]} {
    %c0 = arith.constant 0 : index
    %c0_0 = arith.constant 0 : index
    %0 = vector.load %arg3[%c0, %c0_0] : memref<8x4xf32, #tpu.memory_space<vmem>>, vector<8x4xf32>
    %c0_1 = arith.constant 0 : index
    %c0_2 = arith.constant 0 : index
    %1 = vector.load %arg4[%c0_1, %c0_2] : memref<8x1xf32, #tpu.memory_space<vmem>>, vector<8x1xf32>
    %c0_3 = arith.constant 0 : index
    %c0_4 = arith.constant 0 : index
    %c0_5 = arith.constant 0 : index
    %2 = vector.load %arg2[%c0_3, %c0_4, %c0_5] : memref<1x4x256xf32, #tpu.memory_space<vmem>>, vector<1x4x256xf32>
    %3 = vector.shape_cast %2 : vector<1x4x256xf32> to vector<4x256xf32>
    %cst = arith.constant dense<0.000000e+00> : vector<8x256xf32>
    %4 = tpu.matmul %0, %3, %cst {dimension_numbers = #tpu.dot_dimension_numbers<[1], [0], [0], [1], [0, 0, 1, 1], [], []>} : vector<8x4xf32>, vector<4x256xf32>, vector<8x256xf32> -> vector<8x256xf32>
    %5 = vector.broadcast %1 : vector<8x1xf32> to vector<8x256xf32>
    %6 = arith.addf %4, %5 : vector<8x256xf32>
    %7 = vector.extract_strided_slice %6 {offsets = [0, 0], sizes = [4, 256], strides = [1, 1]} : vector<8x256xf32> to vector<4x256xf32>
    %c0_6 = arith.constant 0 : index
    %c0_7 = arith.constant 0 : index
    %c0_8 = arith.constant 0 : index
    %8 = vector.load %arg5[%c0_6, %c0_7, %c0_8] : memref<1x4x256xf32, #tpu.memory_space<vmem>>, vector<1x4x256xf32>
    %9 = vector.shape_cast %8 : vector<1x4x256xf32> to vector<4x256xf32>
    %10 = vector.shape_cast %7 : vector<4x256xf32> to vector<1x4x256xf32>
    tpu.vector_store %arg5[%c0_6, %c0_7, %c0_8], %10 {strides = array<i32>} : memref<1x4x256xf32, #tpu.memory_space<vmem>>, vector<1x4x256xf32>,
    return
  }
  func.func @transform_0(%arg0: i32, %arg1: i32) -> (i32, i32, i32) {
    %c0_i32 = arith.constant 0 : i32
    %c0_i32_0 = arith.constant 0 : i32
    return %arg0, %c0_i32, %arg1 : i32, i32, i32
  }
  func.func @transform_1(%arg0: i32, %arg1: i32) -> (i32, i32) {
    %c0_i32 = arith.constant 0 : i32
    %c0_i32_0 = arith.constant 0 : i32
    %c0_i32_1 = arith.constant 0 : i32
    return %c0_i32, %c0_i32_0 : i32, i32
  }
  func.func @transform_2(%arg0: i32, %arg1: i32) -> (i32, i32) {
    %c0_i32 = arith.constant 0 : i32
    %c0_i32_0 = arith.constant 0 : i32
    %c0_i32_1 = arith.constant 0 : i32
    return %c0_i32, %c0_i32_0 : i32, i32
  }
  func.func @transform_3(%arg0: i32, %arg1: i32) -> (i32, i32, i32) {
    %c0_i32 = arith.constant 0 : i32
    %c0_i32_0 = arith.constant 0 : i32
    return %arg0, %c0_i32, %arg1 : i32, i32, i32
  }
}

module attributes {stable_mosaic.version = 11 : i64} {
  func.func @_residual_kernel(%arg0: i32, %arg1: i32, %arg2: memref<1x4x256xf32, #tpu.memory_space<vmem>>, %arg3: memref<8x4xf32, #tpu.memory_space<vmem>>, %arg4: memref<8x1xf32, #tpu.memory_space<vmem>>, %arg5: memref<1x4x256xf32, #tpu.memory_space<vmem>>) attributes {dimension_semantics = [#tpu.dimension_semantics<parallel>, #tpu.dimension_semantics<parallel>], iteration_bounds = array<i64: 2, 1>, scalar_prefetch = 0 : i64, scratch_operands = 0 : i64, tpu.core_type = #tpu.core_type<tc>, window_params = [{transform_indices = @transform_0, window_bounds = array<i64: 1, 4, 256>}, {pipeline_mode = #tpu.pipeline_mode<synchronous>, transform_indices = @transform_1, window_bounds = array<i64: 8, 4>}, {pipeline_mode = #tpu.pipeline_mode<synchronous>, transform_indices = @transform_2, window_bounds = array<i64: 8, 1>}, {transform_indices = @transform_3, window_bounds = array<i64: 1, 4, 256>}]} {
    %c0 = arith.constant 0 : index
    %c0_0 = arith.constant 0 : index
    %0 = vector.load %arg3[%c0, %c0_0] : memref<8x4xf32, #tpu.memory_space<vmem>>, vector<8x4xf32>
    %c0_1 = arith.constant 0 : index
    %c0_2 = arith.constant 0 : index
    %1 = vector.load %arg4[%c0_1, %c0_2] : memref<8x1xf32, #tpu.memory_space<vmem>>, vector<8x1xf32>
    %c0_3 = arith.constant 0 : index
    %c0_4 = arith.constant 0 : index
    %c0_5 = arith.constant 0 : index
    %2 = vector.load %arg2[%c0_3, %c0_4, %c0_5] : memref<1x4x256xf32, #tpu.memory_space<vmem>>, vector<1x4x256xf32>
    %3 = vector.shape_cast %2 : vector<1x4x256xf32> to vector<4x256xf32>
    %cst = arith.constant dense<0.000000e+00> : vector<8x256xf32>
    %4 = tpu.matmul %0, %3, %cst {dimension_numbers = #tpu.dot_dimension_numbers<[1], [0], [0], [1], [0, 0, 1, 1], [], []>} : vector<8x4xf32>, vector<4x256xf32>, vector<8x256xf32> -> vector<8x256xf32>
    %5 = vector.broadcast %1 : vector<8x1xf32> to vector<8x256xf32>
    %6 = arith.addf %4, %5 : vector<8x256xf32>
    %7 = vector.extract_strided_slice %6 {offsets = [0, 0], sizes = [4, 256], strides = [1, 1]} : vector<8x256xf32> to vector<4x256xf32>
    %c0_6 = arith.constant 0 : index
    %c0_7 = arith.constant 0 : index
    %c0_8 = arith.constant 0 : index
    %8 = vector.load %arg5[%c0_6, %c0_7, %c0_8] : memref<1x4x256xf32, #tpu.memory_space<vmem>>, vector<1x4x256xf32>
    %9 = vector.shape_cast %8 : vector<1x4x256xf32> to vector<4x256xf32>
    %10 = vector.shape_cast %7 : vector<4x256xf32> to vector<1x4x256xf32>
    tpu.vector_store %arg5[%c0_6, %c0_7, %c0_8], %10 {strides = array<i32>} : memref<1x4x256xf32, #tpu.memory_space<vmem>>, vector<1x4x256xf32>,
    return
  }
  func.func @transform_0(%arg0: i32, %arg1: i32) -> (i32, i32, i32) {
    %c0_i32 = arith.constant 0 : i32
    %c0_i32_0 = arith.constant 0 : i32
    return %arg0, %c0_i32, %arg1 : i32, i32, i32
  }
  func.func @transform_1(%arg0: i32, %arg1: i32) -> (i32, i32) {
    %c0_i32 = arith.constant 0 : i32
    %c0_i32_0 = arith.constant 0 : i32
    %c0_i32_1 = arith.constant 0 : i32
    return %c0_i32, %c0_i32_0 : i32, i32
  }
  func.func @transform_2(%arg0: i32, %arg1: i32) -> (i32, i32) {
    %c0_i32 = arith.constant 0 : i32
    %c0_i32_0 = arith.constant 0 : i32
    %c0_i32_1 = arith.constant 0 : i32
    return %c0_i32, %c0_i32_0 : i32, i32
  }
  func.func @transform_3(%arg0: i32, %arg1: i32) -> (i32, i32, i32) {
    %c0_i32 = arith.constant 0 : i32
    %c0_i32_0 = arith.constant 0 : i32
    return %arg0, %c0_i32, %arg1 : i32, i32, i32
  }
}

</mosaic_0001>

<bundles_post_ra>
// kernel: tpu_custom_call.1
= control target key start
LH: loop header
LB: loop body
LE: loop exit
PB: predicated region body
PF: predicated region fallthrough
CT: control target
= control target key end

     0   :  { %8 = vsyncpa [#allocation3], 0  ;;  %s686_s0 = inlined_call_operand.vmem [shape: f32[2,4,256], index: 0, kind: input, shape index: {}]   ;;  %s687_s1 = inlined_call_operand.vmem [shape: f32[8,4], index: 1, kind: input, shape index: {}]   ;;  %s688_s2 = inlined_call_operand.vmem [shape: f32[8,1], index: 2, kind: input, shape index: {}]   ;;  %s689_s3 = inlined_call_operand.hbm [shape: f32[2,4,256], index: 3, kind: output, shape index: {}]  }
   0x1   :  { %10 = vsyncpa [#allocation3 + $0x1], 0  ;;  %s568_s12 = smov 0   ;;  %s570_s13 = smov 0  }
   0x2   :  { %s572_s14 = smov 0   ;;  %s574_s15 = smov 0  }
   0x3   :  { %s576_s16 = smov 0   ;;  %s578_s17 = smov 0  }
   0x4 LB: > { %s388_s18 = sadd.s32 4294967295, %s543_s17   ;;  %s389_s19 = sadd.s32 4294967294, %s543_s17   ;;  %s543_s17 = sphi %s578_s17, %s16_s17   ;;  %s539_s16 = sphi %s576_s16, %s696_s16   ;;  %s535_s15 = sphi %s574_s15, %s695_s15   ;;  %s531_s14 = sphi %s572_s14, %s694_s14   ;;  %s527_s13 = sphi %s570_s13, %s693_s13   ;;  %s523_s12 = sphi %s568_s12, %s692_s12  }
   0x5   : > { %s28_s20 = sadd.s32 1, %s539_s16  ;;  %s107_s21 = sadd.s32 1, %s531_s14 }
   0x6   : > { %p30_p0 = scmp.ge.s32.totalorder %s28_s20, 2  ;;  %p117_p1 = scmp.ne.s32.totalorder %s531_s14, %s527_s13 }
   0x7   : > { %p118_p2 = scmp.eq.s32.totalorder %s388_s18, 1  ;;  %p123_p3 = scmp.ne.s32.totalorder %s527_s13, %s523_s12 }
   0x8   : > { %s698_s20 = smov (%p30_p0, %s28_s20), 0  ;;  %p124_p5 = scmp.eq.s32.totalorder %s389_s19, 1 }
   0x9   : > { %p608_p4 = por %p118_p2, %p117_p1  ;;  %s102_s23 = ssub.s32 %s539_s16, %s698_s20 }
   0xa   : > { %p392_p6 = scmp.ge.s32.totalorder %s543_s17, 1  ;;  %p105_p7 = scmp.eq.s32.totalorder %s102_s23, 0 }
   0xb   : > { %p615_p8 = por %p124_p5, %p123_p3  ;;  %p161_p9 = scmp.lt.s32.totalorder %s543_s17, 3 }
   0xc   : > { %s621_s25 = scalar_select %p105_p7, %s531_s14, %s107_s21  }
   0xd   : > { %p162_p10 = pnand %p392_p6, %p161_p9 }
   0xe   : > { %p190_p11 = scmp.lt.s32.totalorder (!%p162_p10), %s535_s15, 1  ;;  %v545_v0 = vmov (!%p162_p10), 0.0   ;;  %v546_v1 = vmov (!%p162_p10), 0   ;;  %v201_v2 = vld [vmem:[%s688_s2] sm:$0xff] (!%p162_p10)  ;;  %vm214_vm0 = vcmask (!%p162_p10), 1043456   ;;  %vm210_vm1 = vcmask (!%p162_p10), 31744  }
   0xf   : > { %165 = sbr.rel (%p162_p10) target bundleno = 262 (0x106), region = 32  ;;  %283 = vmatprep.mubr.f32.mxu0 (!%p162_p10), %v545_v0  ;;  %463 = vset.pattern.permute.xlu0 (!%p162_p10), %v546_v1  ;;  %v200_v5 = vld [vmem:[%s687_s1] sm:$0xff] (!%p162_p10)  ;;  %s186_s8 = sand.u32 (!%p162_p10), 1, %s527_s13  }
  0x10   : > { %205 = vperm.xlu0 (!%p162_p10), %463, %v201_v2   ;;  %s393_s9 = sshll.u32 (!%p162_p10), %s186_s8, 3  ;;  %s405_s10 = sshll.u32 (!%p162_p10), %s535_s15, 7 }
  0x11   : > { %s188_s11 = scalar_lea.vmem (!%p162_p10), [#allocation2], %s393_s9  ;;  %s639_s23 = scalar_lea.hbm (!%p162_p10), %s689_s3, %s405_s10 }
  0x12   : > { %s312_s18 = sshll.u32 (!%p162_p10), %s188_s11, 4  ;;  %s296_s26 = scalar_lea.sflag (!%p162_p10), [#allocation3], %s186_s8  ;;  %s641_s18 = int_to_ptr.vmem [resolvable:$true] %s312_s18 }
  0x13   : > { %s465_s27 = scalar_lea.vmem (!%p162_p10), %s641_s18, 128 }
  0x14   : > { %p466_p12 = scmp.ne.s32.totalorder (!%p162_p10), %s641_s18, %s465_s27 }
  0x16   : > { %s191_s28 = scalar_select %p190_p11, %s535_s15, 1 }
  0x17   : > { %p467_p13 = pnand %p466_p12, %p608_p4  ;;  %s547_s15 = smov [#allocation2]  }
  0x18   : > { %s404_s29 = sshll.u32 %s191_s28, 3  ;;  %s469_s28 = sshll.u32 %s547_s15, 4  ;;  %s470_s28 = int_to_ptr.vmem [resolvable:$false] %s469_s28 }
  0x19   : > { %s197_s5 = scalar_lea.vmem %s686_s0, %s404_s29  ;;  %p468_p0 = pneg %p467_p13 }
  0x1a   : > { %v202_v3 = vld [vmem:[%s197_s5] sm:$0xff]  ;;  %s471_s29 = scalar_lea.vmem %s470_s28, 256  ;;  %p472_p1 = scmp.lt.s32.totalorder %s641_s18, %s470_s28 }
  0x1b   : > { %v209_v4 = vcombine.high %v202_v3, %v202_v3  ;;  %p473_p2 = scmp.lt.s32.totalorder %s471_s29, %s465_s27 }
  0x1d   : > { %396 = vmatprep.subr.msk.mxu0 %vm214_vm0, %v209_v4  ;;  %p474_p3 = por %p473_p2, %p472_p1 }
  0x1e   : > { %397 = vmatpush1.msk.msra.mxu0 %vm214_vm0, %v202_v3 }
  0x1f   : > { %398 = vmatmul.mubr.msk.f32.vlgmr.msra.gmra.mrb[0].mxu0 %vm210_vm1, %v200_v5  ;;  %p475_p5 = pnand %p474_p3, %p468_p0 }
  0x8f   : > { %v206_v6 = vpop.permute.xlu0 %205 }
  0xf2   : > { %v285_v7 = vpop.f32.mrb[0].mxu0 }
  0xf3   : > { %v286_v8 = vadd.f32 %v285_v7, %v206_v6  ;;  %v287_v9 = vpop.f32.mrb[1].mxu0 }
  0xf4   : > { %v288_v10 = vadd.f32 %v287_v9, %v206_v6 }
  0xf6   : > { %v292_v11 = vcombine.low %v286_v8, %v288_v10 }
  0xf8   : > { %294 = vst [vmem:[%s188_s11] sm:$0xff] %v292_v11 }
  0xf9   : > { %478 = shalt.err (!%p475_p5)
}
  0xfa   : > { %s479_s30 = scalar_lea.hbm %s639_s23, 128  ;;  %s483_s6 = scalar_lea.hbm %s689_s3, 256 }
  0xfb   : > { %p480_p6 = scmp.ne.s32.totalorder %s639_s23, %s479_s30  ;;  %p484_p10 = scmp.lt.u32.totalorder %s639_s23, %s689_s3 }
  0xfc   : > { %p485_p11 = scmp.lt.u32.totalorder %s483_s6, %s479_s30  ;;  %p487_p13 = scmp.lt.u32.totalorder %s479_s30, %s639_s23 }
  0xfd   : > { %p481_p7 = pnand %p480_p6, %p608_p4 }
  0xfe   : > { %p486_p12 = por %p485_p11, %p484_p10 }
  0xff   : > { %p482_p9 = pneg %p481_p7 }
 0x100   : > { %p488_p0 = por %p487_p13, %p486_p12 }
 0x102   : > { %p489_p1 = pnand %p488_p0, %p482_p9 }
 0x104   : > { %492 = shalt.err (!%p489_p1)
}
 0x105   : > { %406 = dma.vmem_to_hbm [thread:$0]  (%p608_p4), %s641_s18, 128, %s639_s23, %s296_s26  }
 0x106 PF: > { %p412_p2 = scmp.ge.s32.totalorder %s543_s17, 2  ;;  %s324_s9 = sand.u32 1, %s523_s12  }
 0x107   : > { %s325_s10 = scalar_lea.sflag [#allocation3], %s324_s9 }
 0x108   : > { %p409_p3 = pnand %p412_p2, %p615_p8 }
 0x10a   : > { %518 = dma.done.wait (!%p409_p3), %s325_s10, 128  }
 0x10b   : > { %520 = vsyncadd (!%p409_p3), %s325_s10, 4294967168  ;;  %s16_s17 = sadd.s32 1, %s543_s17   ;;  %s692_s12 = smov %s527_s13 }
 0x10c   : > { %p13_p5 = scmp.ge.s32.totalorder %s16_s17, 4   ;;  %s693_s13 = smov %s531_s14 }
 0x10d   : > { %s694_s14 = smov %s621_s25  ;;  %s695_s15 = smov %s539_s16 }
 0x10e   : > { %s696_s16 = smov %s698_s20  ;;  %15 = sbr.rel (!%p13_p5) target bundleno = 4 (0x4), region = 67 }
 0x115   :  { %330 = vsyncpa [#allocation3], 1 }
 0x116   :  { %332 = vsyncpa [#allocation3 + $0x1], 1 }

// kernel: tpu_custom_call.1
= control target key start
LH: loop header
LB: loop body
LE: loop exit
PB: predicated region body
PF: predicated region fallthrough
CT: control target
= control target key end

     0   :  { %8 = vsyncpa [#allocation3], 0  ;;  %s686_s0 = inlined_call_operand.vmem [shape: f32[2,4,256], index: 0, kind: input, shape index: {}]   ;;  %s687_s1 = inlined_call_operand.vmem [shape: f32[8,4], index: 1, kind: input, shape index: {}]   ;;  %s688_s2 = inlined_call_operand.vmem [shape: f32[8,1], index: 2, kind: input, shape index: {}]   ;;  %s689_s3 = inlined_call_operand.hbm [shape: f32[2,4,256], index: 3, kind: output, shape index: {}]  }
   0x1   :  { %10 = vsyncpa [#allocation3 + $0x1], 0  ;;  %s568_s12 = smov 0   ;;  %s570_s13 = smov 0  }
   0x2   :  { %s572_s14 = smov 0   ;;  %s574_s15 = smov 0  }
   0x3   :  { %s576_s16 = smov 0   ;;  %s578_s17 = smov 0  }
   0x4 LB: > { %s388_s18 = sadd.s32 4294967295, %s543_s17   ;;  %s389_s19 = sadd.s32 4294967294, %s543_s17   ;;  %s543_s17 = sphi %s578_s17, %s16_s17   ;;  %s539_s16 = sphi %s576_s16, %s696_s16   ;;  %s535_s15 = sphi %s574_s15, %s695_s15   ;;  %s531_s14 = sphi %s572_s14, %s694_s14   ;;  %s527_s13 = sphi %s570_s13, %s693_s13   ;;  %s523_s12 = sphi %s568_s12, %s692_s12  }
   0x5   : > { %s28_s20 = sadd.s32 1, %s539_s16  ;;  %s107_s21 = sadd.s32 1, %s531_s14 }
   0x6   : > { %p30_p0 = scmp.ge.s32.totalorder %s28_s20, 2  ;;  %p117_p1 = scmp.ne.s32.totalorder %s531_s14, %s527_s13 }
   0x7   : > { %p118_p2 = scmp.eq.s32.totalorder %s388_s18, 1  ;;  %p123_p3 = scmp.ne.s32.totalorder %s527_s13, %s523_s12 }
   0x8   : > { %s698_s20 = smov (%p30_p0, %s28_s20), 0  ;;  %p124_p5 = scmp.eq.s32.totalorder %s389_s19, 1 }
   0x9   : > { %p608_p4 = por %p118_p2, %p117_p1  ;;  %s102_s23 = ssub.s32 %s539_s16, %s698_s20 }
   0xa   : > { %p392_p6 = scmp.ge.s32.totalorder %s543_s17, 1  ;;  %p105_p7 = scmp.eq.s32.totalorder %s102_s23, 0 }
   0xb   : > { %p615_p8 = por %p124_p5, %p123_p3  ;;  %p161_p9 = scmp.lt.s32.totalorder %s543_s17, 3 }
   0xc   : > { %s621_s25 = scalar_select %p105_p7, %s531_s14, %s107_s21  }
   0xd   : > { %p162_p10 = pnand %p392_p6, %p161_p9 }
   0xe   : > { %p190_p11 = scmp.lt.s32.totalorder (!%p162_p10), %s535_s15, 1  ;;  %v545_v0 = vmov (!%p162_p10), 0.0   ;;  %v546_v1 = vmov (!%p162_p10), 0   ;;  %v201_v2 = vld [vmem:[%s688_s2] sm:$0xff] (!%p162_p10)  ;;  %vm214_vm0 = vcmask (!%p162_p10), 1043456   ;;  %vm210_vm1 = vcmask (!%p162_p10), 31744  }
   0xf   : > { %165 = sbr.rel (%p162_p10) target bundleno = 262 (0x106), region = 32  ;;  %283 = vmatprep.mubr.f32.mxu0 (!%p162_p10), %v545_v0  ;;  %463 = vset.pattern.permute.xlu0 (!%p162_p10), %v546_v1  ;;  %v200_v5 = vld [vmem:[%s687_s1] sm:$0xff] (!%p162_p10)  ;;  %s186_s8 = sand.u32 (!%p162_p10), 1, %s527_s13  }
  0x10   : > { %205 = vperm.xlu0 (!%p162_p10), %463, %v201_v2   ;;  %s393_s9 = sshll.u32 (!%p162_p10), %s186_s8, 3  ;;  %s405_s10 = sshll.u32 (!%p162_p10), %s535_s15, 7 }
  0x11   : > { %s188_s11 = scalar_lea.vmem (!%p162_p10), [#allocation2], %s393_s9  ;;  %s639_s23 = scalar_lea.hbm (!%p162_p10), %s689_s3, %s405_s10 }
  0x12   : > { %s312_s18 = sshll.u32 (!%p162_p10), %s188_s11, 4  ;;  %s296_s26 = scalar_lea.sflag (!%p162_p10), [#allocation3], %s186_s8  ;;  %s641_s18 = int_to_ptr.vmem [resolvable:$true] %s312_s18 }
  0x13   : > { %s465_s27 = scalar_lea.vmem (!%p162_p10), %s641_s18, 128 }
  0x14   : > { %p466_p12 = scmp.ne.s32.totalorder (!%p162_p10), %s641_s18, %s465_s27 }
  0x16   : > { %s191_s28 = scalar_select %p190_p11, %s535_s15, 1 }
  0x17   : > { %p467_p13 = pnand %p466_p12, %p608_p4  ;;  %s547_s15 = smov [#allocation2]  }
  0x18   : > { %s404_s29 = sshll.u32 %s191_s28, 3  ;;  %s469_s28 = sshll.u32 %s547_s15, 4  ;;  %s470_s28 = int_to_ptr.vmem [resolvable:$false] %s469_s28 }
  0x19   : > { %s197_s5 = scalar_lea.vmem %s686_s0, %s404_s29  ;;  %p468_p0 = pneg %p467_p13 }
  0x1a   : > { %v202_v3 = vld [vmem:[%s197_s5] sm:$0xff]  ;;  %s471_s29 = scalar_lea.vmem %s470_s28, 256  ;;  %p472_p1 = scmp.lt.s32.totalorder %s641_s18, %s470_s28 }
  0x1b   : > { %v209_v4 = vcombine.high %v202_v3, %v202_v3  ;;  %p473_p2 = scmp.lt.s32.totalorder %s471_s29, %s465_s27 }
  0x1d   : > { %396 = vmatprep.subr.msk.mxu0 %vm214_vm0, %v209_v4  ;;  %p474_p3 = por %p473_p2, %p472_p1 }
  0x1e   : > { %397 = vmatpush1.msk.msra.mxu0 %vm214_vm0, %v202_v3 }
  0x1f   : > { %398 = vmatmul.mubr.msk.f32.vlgmr.msra.gmra.mrb[0].mxu0 %vm210_vm1, %v200_v5  ;;  %p475_p5 = pnand %p474_p3, %p468_p0 }
  0x8f   : > { %v206_v6 = vpop.permute.xlu0 %205 }
  0xf2   : > { %v285_v7 = vpop.f32.mrb[0].mxu0 }
  0xf3   : > { %v286_v8 = vadd.f32 %v285_v7, %v206_v6  ;;  %v287_v9 = vpop.f32.mrb[1].mxu0 }
  0xf4   : > { %v288_v10 = vadd.f32 %v287_v9, %v206_v6 }
  0xf6   : > { %v292_v11 = vcombine.low %v286_v8, %v288_v10 }
  0xf8   : > { %294 = vst [vmem:[%s188_s11] sm:$0xff] %v292_v11 }
  0xf9   : > { %478 = shalt.err (!%p475_p5)
}
  0xfa   : > { %s479_s30 = scalar_lea.hbm %s639_s23, 128  ;;  %s483_s6 = scalar_lea.hbm %s689_s3, 256 }
  0xfb   : > { %p480_p6 = scmp.ne.s32.totalorder %s639_s23, %s479_s30  ;;  %p484_p10 = scmp.lt.u32.totalorder %s639_s23, %s689_s3 }
  0xfc   : > { %p485_p11 = scmp.lt.u32.totalorder %s483_s6, %s479_s30  ;;  %p487_p13 = scmp.lt.u32.totalorder %s479_s30, %s639_s23 }
  0xfd   : > { %p481_p7 = pnand %p480_p6, %p608_p4 }
  0xfe   : > { %p486_p12 = por %p485_p11, %p484_p10 }
  0xff   : > { %p482_p9 = pneg %p481_p7 }
 0x100   : > { %p488_p0 = por %p487_p13, %p486_p12 }
 0x102   : > { %p489_p1 = pnand %p488_p0, %p482_p9 }
 0x104   : > { %492 = shalt.err (!%p489_p1)
}
 0x105   : > { %406 = dma.vmem_to_hbm [thread:$0]  (%p608_p4), %s641_s18, 128, %s639_s23, %s296_s26  }
 0x106 PF: > { %p412_p2 = scmp.ge.s32.totalorder %s543_s17, 2  ;;  %s324_s9 = sand.u32 1, %s523_s12  }
 0x107   : > { %s325_s10 = scalar_lea.sflag [#allocation3], %s324_s9 }
 0x108   : > { %p409_p3 = pnand %p412_p2, %p615_p8 }
 0x10a   : > { %518 = dma.done.wait (!%p409_p3), %s325_s10, 128  }
 0x10b   : > { %520 = vsyncadd (!%p409_p3), %s325_s10, 4294967168  ;;  %s16_s17 = sadd.s32 1, %s543_s17   ;;  %s692_s12 = smov %s527_s13 }
 0x10c   : > { %p13_p5 = scmp.ge.s32.totalorder %s16_s17, 4   ;;  %s693_s13 = smov %s531_s14 }
 0x10d   : > { %s694_s14 = smov %s621_s25  ;;  %s695_s15 = smov %s539_s16 }
 0x10e   : > { %s696_s16 = smov %s698_s20  ;;  %15 = sbr.rel (!%p13_p5) target bundleno = 4 (0x4), region = 67 }
 0x115   :  { %330 = vsyncpa [#allocation3], 1 }
 0x116   :  { %332 = vsyncpa [#allocation3 + $0x1], 1 }

</bundles_post_ra>
